<compile_context>
chip_gen: v7x
topology: tpu7x:2x2x1
jax: 0.10.0
libtpu: 0.0.40
codegen_flags: <defaults>
</compile_context>

<pallas_src>
import jax
import jax.numpy as jnp
from jax.experimental import pallas as pl
from jax.experimental.pallas import tpu as pltpu


def _swfs_kernel(x_ref, w_ref, o_ref):
    # x_ref: (tb, tf) input tile; w_ref: (1, tf) weight row broadcast over
    # the batch (sublane) axis.
    o_ref[...] = (x_ref[...] * w_ref[...]).astype(o_ref.dtype)


def _vmem_capacity_bytes() -> int:
    # Conservative fallback = v7x per-TensorCore VMEM if the query fails.
    try:
        return int(pltpu.get_tpu_info().vmem_capacity_bytes)
    except Exception:
        return 64 << 20


def sparse_weighted_feature_selector(x: jax.Array, weight: jax.Array) -> jax.Array:
    """Forward pass: out = x * weight (weight broadcast over batch)."""
    B, F = x.shape
    assert weight.shape == (F,), "weight must have shape (n_features,)"

    # PyTorch-style dtype promotion (input * weight).  Casting weight to
    # x.dtype would cut output bytes for bf16 activations but deviates from
    # torch promotion, so we keep result_type.
    out_dtype = jnp.result_type(x.dtype, weight.dtype)
    x_bytes = jnp.dtype(x.dtype).itemsize
    o_bytes = jnp.dtype(out_dtype).itemsize
    w_bytes = jnp.dtype(weight.dtype).itemsize
    sub = max(8, 32 // x_bytes)  # sublane packing: 8 f32 / 16 bf16 / 32 int8

    # ---- generation-aware block / scoped-VMEM budgets --------------------
    vmem_phys = _vmem_capacity_bytes()
    if vmem_phys >= (100 << 20):          # v5e / v6e: 128 MiB physical VMEM
        target_block_bytes = 12 << 20
        vmem_cap = 96 << 20
    else:                                 # v7x: 64 MiB physical per TC
        target_block_bytes = 8 << 20
        vmem_cap = 48 << 20

    # ---- feature tile: lane-dense multiple of 128 (<= F), or full row ----
    if F <= 128:
        tf = F                              # full dim: always a legal block
    else:
        tf = min(2048, (F // 128) * 128)    # 128-aligned; ragged tail masked

    # ---- batch tile: aim for ~target_block_bytes per input block ---------
    rows = (target_block_bytes // max(tf * x_bytes, 1)) // sub * sub
    rows = max(rows, sub)
    if B <= sub:
        tb = B                              # full batch dim (legal block)
    else:
        tb = min(rows, (B // sub) * sub)    # keep tb <= B; tail block masked

    f_tiles = pl.cdiv(F, tf)
    b_tiles = pl.cdiv(B, tb)

    w2d = weight.reshape(1, F)

    # ---- explicit VMEM budget: double-buffered in/out blocks + weight ----
    block_in = tb * tf * x_bytes
    block_out = tb * tf * o_bytes
    vmem_needed = 2 * (block_in + block_out) + 2 * tf * w_bytes + (1 << 20)
    vmem_limit = int(min(max(vmem_needed, 16 << 20), vmem_cap))

    cost = pl.CostEstimate(
        flops=B * F,
        transcendentals=0,
        bytes_accessed=B * F * x_bytes       # read x
        + B * F * o_bytes                    # write out
        + F * w_bytes,                       # read weight
    )

    if f_tiles == 1:
        # Single feature block: collapse to a 1-D batch grid so the only grid
        # axis is parallel/core-shardable (v7x megacore).  Weight block index
        # is constant, so it stays resident.
        grid = (b_tiles,)
        in_specs = [
            pl.BlockSpec((tb, tf), lambda b: (b, 0)),   # input tile
            pl.BlockSpec((1, tf), lambda b: (0, 0)),    # weight row (resident)
        ]
        out_spec = pl.BlockSpec((tb, tf), lambda b: (b, 0))
        dims = ("parallel",)
    else:
        # Feature axis outermost -> weight block index constant across the
        # inner batch loop (no redundant weight re-DMA).
        grid = (f_tiles, b_tiles)
        in_specs = [
            pl.BlockSpec((tb, tf), lambda f, b: (b, f)),   # input tile
            pl.BlockSpec((1, tf), lambda f, b: (0, f)),    # weight row
        ]
        out_spec = pl.BlockSpec((tb, tf), lambda f, b: (b, f))
        dims = ("parallel", "parallel")

    return pl.pallas_call(
        _swfs_kernel,
        out_shape=jax.ShapeDtypeStruct((B, F), out_dtype),
        grid_spec=pltpu.PrefetchScalarGridSpec(
            num_scalar_prefetch=0,
            grid=grid,
            in_specs=in_specs,
            out_specs=out_spec,
        ),
        compiler_params=pltpu.CompilerParams(
            dimension_semantics=dims,
            vmem_limit_bytes=vmem_limit,
        ),
        cost_estimate=cost,
    )(x, w2d)


if __name__ == "__main__":
    key = jax.random.PRNGKey(0)
    k_x, k_w, k_x2 = jax.random.split(key, 3)

    batch = 8
    n_features = 128
    sparse_rate = 0.1  # only affects backward; unused in forward (kept for parity)

    # torch.rand((n_features,)) -> uniform [0, 1)
    weight = jax.random.uniform(k_w, (n_features,), dtype=jnp.float32)
    x = jax.random.normal(k_x, (batch, n_features), dtype=jnp.float32)

    out = jax.block_until_ready(sparse_weighted_feature_selector(x, weight))
    ref = x * weight[None, :]
    assert out.shape == ref.shape
    assert out.dtype == ref.dtype
    assert jnp.allclose(out, ref, atol=1e-6, rtol=1e-6)

    # ragged batch + non-128-aligned feature dim: exercises the OOB-masked
    # tail blocks (no wrapper pad/slice copies are issued).
    b2, f2 = 11, 200
    w2 = jax.random.uniform(k_w, (f2,), dtype=jnp.float32)
    x2 = jax.random.normal(k_x2, (b2, f2), dtype=jnp.float32)
    out2 = jax.block_until_ready(sparse_weighted_feature_selector(x2, w2))
    assert jnp.allclose(out2, x2 * w2[None, :], atol=1e-6, rtol=1e-6)

    print("KERNEL_OK")
</pallas_src>

<mosaic_0001>
module attributes {stable_mosaic.version = 11 : i64} {
  func.func @_swfs_kernel(%arg0: i32, %arg1: memref<8x128xf32, #tpu.memory_space<vmem>>, %arg2: memref<1x128xf32, #tpu.memory_space<vmem>>, %arg3: memref<8x128xf32, #tpu.memory_space<vmem>>) attributes {dimension_semantics = [#tpu.dimension_semantics<parallel>], iteration_bounds = array<i64: 1>, scalar_prefetch = 0 : i64, scratch_operands = 0 : i64, tpu.core_type = #tpu.core_type<tc>, window_params = [{transform_indices = @transform_0, window_bounds = array<i64: 8, 128>}, {pipeline_mode = #tpu.pipeline_mode<synchronous>, transform_indices = @transform_1, window_bounds = array<i64: 1, 128>}, {transform_indices = @transform_2, window_bounds = array<i64: 8, 128>}]} {
    %c0 = arith.constant 0 : index
    %c0_0 = arith.constant 0 : index
    %0 = vector.load %arg1[%c0, %c0_0] : memref<8x128xf32, #tpu.memory_space<vmem>>, vector<8x128xf32>
    %c0_1 = arith.constant 0 : index
    %c0_2 = arith.constant 0 : index
    %1 = vector.load %arg2[%c0_1, %c0_2] : memref<1x128xf32, #tpu.memory_space<vmem>>, vector<1x128xf32>
    %2 = vector.broadcast %1 : vector<1x128xf32> to vector<8x128xf32>
    %3 = arith.mulf %0, %2 : vector<8x128xf32>
    %c0_3 = arith.constant 0 : index
    %c0_4 = arith.constant 0 : index
    %4 = vector.load %arg3[%c0_3, %c0_4] : memref<8x128xf32, #tpu.memory_space<vmem>>, vector<8x128xf32>
    tpu.vector_store %arg3[%c0_3, %c0_4], %3 {strides = array<i32>} : memref<8x128xf32, #tpu.memory_space<vmem>>, vector<8x128xf32>,
    return
  }
  func.func @transform_0(%arg0: i32) -> (i32, i32) {
    %c0_i32 = arith.constant 0 : i32
    %c0_i32_0 = arith.constant 0 : i32
    return %arg0, %c0_i32 : i32, i32
  }
  func.func @transform_1(%arg0: i32) -> (i32, i32) {
    %c0_i32 = arith.constant 0 : i32
    %c0_i32_0 = arith.constant 0 : i32
    %c0_i32_1 = arith.constant 0 : i32
    return %c0_i32, %c0_i32_0 : i32, i32
  }
  func.func @transform_2(%arg0: i32) -> (i32, i32) {
    %c0_i32 = arith.constant 0 : i32
    %c0_i32_0 = arith.constant 0 : i32
    return %arg0, %c0_i32 : i32, i32
  }
}

</mosaic_0001>

<bundles_post_ra>
// kernel: tpu_custom_call.1
= control target key start
LH: loop header
LB: loop body
LE: loop exit
PB: predicated region body
PF: predicated region fallthrough
CT: control target
= control target key end

     0   :  { %7 = vsyncpa [#allocation3], 0  ;;  %s144_s0 = inlined_call_operand.hbm [shape: f32[8,128], index: 0, kind: input, shape index: {}]   ;;  %s145_s1 = inlined_call_operand.vmem [shape: f32[1,128], index: 1, kind: input, shape index: {}]   ;;  %s146_s2 = inlined_call_operand.hbm [shape: f32[8,128], index: 2, kind: output, shape index: {}]  }
   0x1   :  { %8 = vsyncpa [#allocation4], 0  ;;  %s100_s9 = smov [#allocation2]   ;;  %s52_s13 = scalar_lea.hbm %s144_s0, 128 }
   0x2   :  { %s15_s10 = sshll.u32 %s100_s9, 4  ;;  %p53_p0 = scmp.ne.s32.totalorder %s144_s0, %s52_s13  ;;  %s16_s10 = int_to_ptr.vmem [resolvable:$true] %s15_s10 }
   0x3   :  { %p56_p1 = scmp.lt.u32.totalorder %s52_s13, %s144_s0 }
   0x5   :  { %p58_p2 = pnand %p56_p1, %p53_p0 }
   0x7   :  { %61 = shalt.err (!%p58_p2)
}
   0x8   :  { %s62_s18 = scalar_lea.vmem %s16_s10, 128  ;;  %p67_p4 = scmp.lt.s32.totalorder %s16_s10, %s16_s10 }
   0x9   :  { %p63_p3 = scmp.ne.s32.totalorder %s16_s10, %s62_s18  ;;  %p68_p5 = scmp.lt.s32.totalorder %s62_s18, %s62_s18 }
   0xb   :  { %p69_p6 = por %p68_p5, %p67_p4 }
   0xd   :  { %p70_p7 = pnand %p69_p6, %p63_p3 }
   0xf   :  { %73 = shalt.err (!%p70_p7)
}
  0x10   :  { %18 = dma.hbm_to_vmem [thread:$0]  %s144_s0, 128, %s16_s10, [#allocation3]  }
  0x11   :  { %96 = dma.done.wait [#allocation3], 128  }
  0x12   :  { %97 = vsyncadd [#allocation3], 4294967168  ;;  %s101_s21 = smov [#allocation5]   ;;  %v24_v0 = vld [vmem:[#allocation2] sm:$0xff] }
  0x13   :  { %s40_s22 = sshll.u32 %s101_s21, 4  ;;  %v49_v1 = vld [vmem:[%s145_s1] ss:$0 sm:$0xff]  ;;  %s41_s22 = int_to_ptr.vmem [resolvable:$true] %s40_s22 }
  0x14   :  { %v32_v2 = vmul.f32 %v49_v1, %v24_v0  ;;  %s74_s25 = scalar_lea.vmem %s41_s22, 128  ;;  %p79_p9 = scmp.lt.s32.totalorder %s41_s22, %s41_s22 }
  0x15   :  { %p75_p8 = scmp.ne.s32.totalorder %s41_s22, %s74_s25  ;;  %p80_p10 = scmp.lt.s32.totalorder %s74_s25, %s74_s25 }
  0x16   :  { %33 = vst [vmem:[#allocation5] sm:$0xff] %v32_v2 }
  0x17   :  { %p81_p11 = por %p80_p10, %p79_p9 }
  0x19   :  { %p82_p12 = pnand %p81_p11, %p75_p8 }
  0x1b   :  { %85 = shalt.err (!%p82_p12)
}
  0x1c   :  { %s86_s27 = scalar_lea.hbm %s146_s2, 128 }
  0x1d   :  { %p87_p13 = scmp.ne.s32.totalorder %s146_s2, %s86_s27  ;;  %p90_p0 = scmp.lt.u32.totalorder %s86_s27, %s146_s2 }
  0x1f   :  { %p92_p1 = pnand %p90_p0, %p87_p13 }
  0x21   :  { %95 = shalt.err (!%p92_p1)
}
  0x22   :  { %43 = dma.vmem_to_hbm [thread:$0]  %s41_s22, 128, %s146_s2, [#allocation4]  }
  0x23   :  { %98 = dma.done.wait [#allocation4], 128  }
  0x24   :  { %99 = vsyncadd [#allocation4], 4294967168 }
  0x25   :  { %47 = vsyncpa [#allocation3], 1 }
  0x26   :  { %48 = vsyncpa [#allocation4], 1 }

</bundles_post_ra>
